<compile_context>
chip_gen: v6e
topology: v6e:2x2x1
jax: 0.10.0
libtpu: 0.0.40
codegen_flags: <defaults>
</compile_context>

<pallas_src>
import functools

import jax
import jax.numpy as jnp
from jax.experimental import pallas as pl
from jax.experimental.pallas import tpu as pltpu

_N_COPIES = 16


def _vmem_budget_bytes() -> int:
    """~Half of physical per-core VMEM: 32 MiB on v7x, 64 MiB on v5e/v6e."""
    cap = 64 << 20  # conservative default (v7x physical VMEM per TensorCore)
    try:
        cap = int(getattr(pltpu.get_tpu_info(), "vmem_capacity_bytes", cap))
    except Exception:
        pass
    return max(16 << 20, min(cap // 2, 96 << 20))


def _largest_aligned_divisor(n, cap, align):
    """Largest d <= cap with d % align == 0 and n % d == 0 (None if none)."""
    cap = min(cap, n)
    d = (cap // align) * align
    while d >= align:
        if n % d == 0:
            return d
        d -= align
    return None


def _choose_tiles(n, itemsize, budget):
    """Row-slab height tm and K-tile tk for the lane-aligned (n % 128 == 0) path."""
    # tm: bound the output double-buffer + f32 accumulator ~ tm*n*(2*itemsize+4).
    out_budget = (2 * budget) // 5
    tm_cap = max(8, out_budget // (n * (2 * itemsize + 4)))
    if n < 256:
        tm = n
    elif n <= 512:
        tm = n // 2                      # two slabs -> both v7x TCs get work
    else:
        tm = 512 if budget >= (48 << 20) else 256   # bigger slabs on v5e/v6e
    if tm != n:
        tm = _largest_aligned_divisor(n, min(tm, tm_cap), 8) or n

    # tk: keep the (tk, n) rhs double-buffer within budget (K-tiling for big N).
    rhs_budget = (2 * budget) // 5
    if 2 * n * n * itemsize <= rhs_budget:
        tk = n                            # full K resident -> grid_k == 1
    else:
        pref = 1024 if itemsize <= 2 else 512
        cap = min(pref, max(128, rhs_budget // (2 * n * itemsize)))
        tk = _largest_aligned_divisor(n, cap, 128) or n
    return tm, tk


def _mm_copy_tiled_kernel(x_rows_ref, x_cols_ref, o_ref, acc_ref, *, grid_k):
    """Grid = (row_slabs, grid_k + 15).

    Steps j < grid_k accumulate the K reduction into the f32 VMEM scratch.
    Steps j >= grid_k - 1 store one lane-dense (tm, n) output copy each
    (16 copies total; the output index_map walks the copy blocks).
    """
    j = pl.program_id(1)

    @pl.when(j == 0)
    def _init():
        acc_ref[...] = jnp.zeros_like(acc_ref)

    @pl.when(j < grid_k)
    def _accumulate():
        acc_ref[...] += jnp.dot(
            x_rows_ref[...], x_cols_ref[...], preferred_element_type=jnp.float32
        )

    @pl.when(j >= grid_k - 1)
    def _store_copy():
        o_ref[...] = acc_ref[...].astype(o_ref.dtype)


def _mm_small_kernel(x_rows_ref, x_full_ref, o_ref):
    """Fallback for n % 128 != 0: one matmul, 16 unrolled column-block stores."""
    n = x_full_ref.shape[0]
    m = jnp.dot(
        x_rows_ref[...], x_full_ref[...], preferred_element_type=jnp.float32
    ).astype(o_ref.dtype)
    for c in range(_N_COPIES):           # no jnp.tile temporary
        o_ref[:, c * n:(c + 1) * n] = m


def model_forward(x1, x2=None):
    """Pallas equivalent of Model.forward: cat of 16 copies of mm(x1, x1), dim=1."""
    del x2  # unused by the reference module
    n, k = x1.shape
    assert n == k, "torch.mm(x1, x1) requires a square matrix"
    out_cols = _N_COPIES * n
    itemsize = jnp.dtype(x1.dtype).itemsize
    budget = _vmem_budget_bytes()

    cost = pl.CostEstimate(
        flops=2 * n * n * n,                                   # single matmul
        transcendentals=0,
        bytes_accessed=(2 + _N_COPIES) * n * n * itemsize,     # reads + 16x write
    )
    out_shape = jax.ShapeDtypeStruct((n, out_cols), x1.dtype)

    if n % 128 != 0:
        # Lane-unaligned n: copy-axis output blocks of width n would violate the
        # (8, 128) lane rule, so use a full-width (tm, 16*n) output block with
        # per-copy unrolled stores.  Row-slab the grid for larger n.
        # TODO(synk): large n with no 8-aligned divisor falls back to tm = n.
        tm = (_largest_aligned_divisor(n, 256, 8) or n) if n > 512 else n
        gm = n // tm
        return pl.pallas_call(
            _mm_small_kernel,
            out_shape=out_shape,
            grid_spec=pltpu.PrefetchScalarGridSpec(
                num_scalar_prefetch=0,
                grid=(gm,),
                in_specs=[
                    pl.BlockSpec((tm, n), lambda i: (i, 0)),   # row slab of x1
                    pl.BlockSpec((n, n), lambda i: (0, 0)),    # full x1 (constant)
                ],
                out_specs=pl.BlockSpec((tm, out_cols), lambda i: (i, 0)),
            ),
            compiler_params=pltpu.CompilerParams(
                dimension_semantics=("parallel",),
                vmem_limit_bytes=budget,
            ),
            cost_estimate=cost,
        )(x1, x1)

    # ---- Lane-aligned path: copy-axis tiled output + optional K-tiling. ----
    tm, tk = _choose_tiles(n, itemsize, budget)
    gm, gk = n // tm, n // tk

    if gk == 1:
        # Constant blocks during the whole slab: fetched exactly once.
        lhs_map = lambda i, j: (i, 0)
        rhs_map = lambda i, j: (0, 0)
        out_map = lambda i, j: (i, j)
    else:
        last_k = gk - 1
        # Clamp K index on the copy-tail steps so inputs are never re-fetched;
        # output block index walks the 16 copies on steps j >= gk - 1.
        lhs_map = lambda i, j: (i, jnp.minimum(j, last_k))
        rhs_map = lambda i, j: (jnp.minimum(j, last_k), 0)
        out_map = lambda i, j: (i, jnp.maximum(j - last_k, 0))

    kernel = functools.partial(_mm_copy_tiled_kernel, grid_k=gk)

    return pl.pallas_call(
        kernel,
        out_shape=out_shape,
        grid_spec=pltpu.PrefetchScalarGridSpec(
            num_scalar_prefetch=0,
            grid=(gm, gk + (_N_COPIES - 1)),
            in_specs=[
                pl.BlockSpec((tm, tk), lhs_map),   # lhs row slab / K tile
                pl.BlockSpec((tk, n), rhs_map),    # rhs K tile (full width)
            ],
            out_specs=pl.BlockSpec((tm, n), out_map),
            scratch_shapes=[pltpu.VMEM((tm, n), jnp.float32)],
        ),
        compiler_params=pltpu.CompilerParams(
            dimension_semantics=("parallel", "arbitrary"),
            vmem_limit_bytes=budget,
        ),
        cost_estimate=cost,
    )(x1, x1)


if __name__ == "__main__":
    key = jax.random.PRNGKey(0)
    k1, k2 = jax.random.split(key)

    # Primary (lane-aligned) shape: exercises the copy-axis-tiled path with two
    # row slabs (256 -> tm = 128), i.e. both v7x TensorCores get work.
    n = 256
    x1 = jax.random.normal(k1, (n, n), dtype=jnp.float32)
    x2 = jax.random.normal(k2, (n, n), dtype=jnp.float32)
    out = jax.block_until_ready(model_forward(x1, x2))
    v = jnp.dot(x1, x1, precision=jax.lax.Precision.HIGHEST)
    ref = jnp.concatenate([v] * _N_COPIES, axis=1)
    assert out.shape == (n, _N_COPIES * n), out.shape
    assert jnp.allclose(out, ref, atol=1e-2, rtol=1e-2), "mismatch (aligned path)"

    # Tiny lane-unaligned shape (same regime as the module's own 2x2 example).
    m = 8
    y1 = jax.random.normal(k2, (m, m), dtype=jnp.float32)
    out_s = jax.block_until_ready(model_forward(y1, None))
    v_s = jnp.dot(y1, y1, precision=jax.lax.Precision.HIGHEST)
    ref_s = jnp.concatenate([v_s] * _N_COPIES, axis=1)
    assert out_s.shape == (m, _N_COPIES * m), out_s.shape
    assert jnp.allclose(out_s, ref_s, atol=1e-4, rtol=1e-4), "mismatch (small path)"

    print("KERNEL_OK")
</pallas_src>

<mosaic_0001>
module attributes {stable_mosaic.version = 11 : i64} {
  func.func @_mm_copy_tiled_kernel(%arg0: i32, %arg1: i32, %arg2: memref<128x256xf32, #tpu.memory_space<vmem>>, %arg3: memref<256x256xf32, #tpu.memory_space<vmem>>, %arg4: memref<128x256xf32, #tpu.memory_space<vmem>>, %arg5: memref<128x256xf32, #tpu.memory_space<vmem>>) attributes {dimension_semantics = [#tpu.dimension_semantics<parallel>, #tpu.dimension_semantics<arbitrary>], iteration_bounds = array<i64: 2, 16>, scalar_prefetch = 0 : i64, scratch_operands = 1 : i64, tpu.core_type = #tpu.core_type<tc>, window_params = [{transform_indices = @transform_0, window_bounds = array<i64: 128, 256>}, {pipeline_mode = #tpu.pipeline_mode<synchronous>, transform_indices = @transform_1, window_bounds = array<i64: 256, 256>}, {transform_indices = @transform_2, window_bounds = array<i64: 128, 256>}]} {
    %c0_i32 = arith.constant 0 : i32
    %0 = arith.cmpi eq, %arg1, %c0_i32 : i32
    %1 = arith.extui %0 : i1 to i32
    %c0_i32_0 = arith.constant 0 : i32
    %2 = arith.cmpi ne, %1, %c0_i32_0 : i32
    scf.if %2 {
      %cst = arith.constant 0.000000e+00 : f32
      %9 = vector.broadcast %cst : f32 to vector<128x256xf32>
      %c0 = arith.constant 0 : index
      %c0_4 = arith.constant 0 : index
      %10 = vector.load %arg5[%c0, %c0_4] : memref<128x256xf32, #tpu.memory_space<vmem>>, vector<128x256xf32>
      tpu.vector_store %arg5[%c0, %c0_4], %9 {strides = array<i32>} : memref<128x256xf32, #tpu.memory_space<vmem>>, vector<128x256xf32>,
    } else {
    }
    %c1_i32 = arith.constant 1 : i32
    %3 = arith.cmpi slt, %arg1, %c1_i32 : i32
    %4 = arith.extui %3 : i1 to i32
    %c0_i32_1 = arith.constant 0 : i32
    %5 = arith.cmpi ne, %4, %c0_i32_1 : i32
    scf.if %5 {
      %c0 = arith.constant 0 : index
      %c0_4 = arith.constant 0 : index
      %9 = vector.load %arg5[%c0, %c0_4] : memref<128x256xf32, #tpu.memory_space<vmem>>, vector<128x256xf32>
      %c0_5 = arith.constant 0 : index
      %c0_6 = arith.constant 0 : index
      %10 = vector.load %arg2[%c0_5, %c0_6] : memref<128x256xf32, #tpu.memory_space<vmem>>, vector<128x256xf32>
      %c0_7 = arith.constant 0 : index
      %c0_8 = arith.constant 0 : index
      %11 = vector.load %arg3[%c0_7, %c0_8] : memref<256x256xf32, #tpu.memory_space<vmem>>, vector<256x256xf32>
      %cst = arith.constant dense<0.000000e+00> : vector<128x256xf32>
      %12 = tpu.matmul %10, %11, %cst {dimension_numbers = #tpu.dot_dimension_numbers<[1], [0], [0], [1], [0, 0, 1, 1], [], []>} : vector<128x256xf32>, vector<256x256xf32>, vector<128x256xf32> -> vector<128x256xf32>
      %13 = arith.addf %9, %12 : vector<128x256xf32>
      %c0_9 = arith.constant 0 : index
      %c0_10 = arith.constant 0 : index
      %14 = vector.load %arg5[%c0_9, %c0_10] : memref<128x256xf32, #tpu.memory_space<vmem>>, vector<128x256xf32>
      tpu.vector_store %arg5[%c0_9, %c0_10], %13 {strides = array<i32>} : memref<128x256xf32, #tpu.memory_space<vmem>>, vector<128x256xf32>,
    } else {
    }
    %c0_i32_2 = arith.constant 0 : i32
    %6 = arith.cmpi sge, %arg1, %c0_i32_2 : i32
    %7 = arith.extui %6 : i1 to i32
    %c0_i32_3 = arith.constant 0 : i32
    %8 = arith.cmpi ne, %7, %c0_i32_3 : i32
    scf.if %8 {
      %c0 = arith.constant 0 : index
      %c0_4 = arith.constant 0 : index
      %9 = vector.load %arg5[%c0, %c0_4] : memref<128x256xf32, #tpu.memory_space<vmem>>, vector<128x256xf32>
      %c0_5 = arith.constant 0 : index
      %c0_6 = arith.constant 0 : index
      %10 = vector.load %arg4[%c0_5, %c0_6] : memref<128x256xf32, #tpu.memory_space<vmem>>, vector<128x256xf32>
      tpu.vector_store %arg4[%c0_5, %c0_6], %9 {strides = array<i32>} : memref<128x256xf32, #tpu.memory_space<vmem>>, vector<128x256xf32>,
    } else {
    }
    return
  }
  func.func @transform_0(%arg0: i32, %arg1: i32) -> (i32, i32) {
    %c0_i32 = arith.constant 0 : i32
    %c0_i32_0 = arith.constant 0 : i32
    return %arg0, %c0_i32 : i32, i32
  }
  func.func @transform_1(%arg0: i32, %arg1: i32) -> (i32, i32) {
    %c0_i32 = arith.constant 0 : i32
    %c0_i32_0 = arith.constant 0 : i32
    %c0_i32_1 = arith.constant 0 : i32
    return %c0_i32, %c0_i32_0 : i32, i32
  }
  func.func @transform_2(%arg0: i32, %arg1: i32) -> (i32, i32) {
    %c0_i32 = arith.constant 0 : i32
    return %arg0, %arg1 : i32, i32
  }
}

</mosaic_0001>

<bundles_post_ra>
// kernel: tpu_custom_call.1
= control target key start
LH: loop header
LB: loop body
LE: loop exit
PB: predicated region body
PF: predicated region fallthrough
CT: control target
= control target key end

     0   :  { %s1483_s0 = inlined_call_operand.hbm [shape: f32[256,256], index: 0, kind: input, shape index: {}]   ;;  %s1484_s1 = inlined_call_operand.hbm [shape: f32[256,256], index: 1, kind: input, shape index: {}]   ;;  %s1485_s2 = inlined_call_operand.hbm [shape: f32[256,4096], index: 2, kind: output, shape index: {}]  }
   0x1   :  { %1494 = sst [smem:[#allocation17_spill]] %s1484_s1 }
   0x2   :  { %7 = vsyncpa [#allocation4], 0 }
   0x3   :  { %9 = vsyncpa [#allocation4 + $0x1], 0 }
   0x4   :  { %10 = vsyncpa [#allocation7], 0 }
   0x5   :  { %11 = vsyncpa [#allocation5], 0 }
   0x6   :  { %13 = vsyncpa [#allocation5 + $0x1], 0  ;;  %s1183_s9 = smov 0   ;;  %s1185_s10 = smov 0  }
   0x7   :  { %s1187_s11 = smov 0   ;;  %s1189_s12 = smov 0  }
   0x8   :  { %s1191_s13 = smov 0   ;;  %s1193_s14 = smov 0  }
   0x9   :  { %s1195_s15 = smov 0   ;;  %s1197_s16 = smov 0  }
   0xa   :  { %s1199_s17 = smov 0   ;;  %s1201_s18 = smov 0  }
   0xb   :  { %s1203_s19 = smov 0  }
   0xc LB: > { %1495 = sst [smem:[#allocation12_spill]] %s1117_s9  ;;  %s770_s20 = sadd.s32 4294967295, %s1157_s19   ;;  %s1157_s19 = sphi %s1203_s19, %s19_s19   ;;  %s1153_s18 = sphi %s1201_s18, %s1524_s18   ;;  %s1149_s17 = sphi %s1199_s17, %s1515_s17   ;;  %s1145_s16 = sphi %s1197_s16, %s1523_s16   ;;  %s1141_s15 = sphi %s1195_s15, %s1514_s15   ;;  %s1137_s14 = sphi %s1193_s14, %s1522_s14   ;;  %s1133_s13 = sphi %s1191_s13, %s1521_s13   ;;  %s1129_s12 = sphi %s1189_s12, %s1520_s12   ;;  %s1125_s11 = sphi %s1187_s11, %s1519_s11   ;;  %s1121_s10 = sphi %s1185_s10, %s1518_s10   ;;  %s1117_s9 = sphi %s1183_s9, %s1517_s9  }
   0xd   : > { %1496 = sst [smem:[#allocation13_spill]] %s1149_s17  ;;  %s771_s21 = sadd.s32 4294967294, %s1157_s19  }
   0xe   : > { %p51_p0 = scmp.ne.s32.totalorder %s1133_s13, %s1129_s12  ;;  %p1239_p1 = scmp.eq.s32.totalorder %s770_s20, 0 }
   0xf   : > { %s87_s23 = sadd.s32 1, %s1125_s11  ;;  %p97_p2 = scmp.ne.s32.totalorder %s1125_s11, %s1121_s10 }
  0x10   : > { %p1248_p3 = por %p1239_p1, %p51_p0  ;;  %p98_p4 = scmp.eq.s32.totalorder %s770_s20, 31 }
  0x11   : > { %p103_p5 = scmp.ne.s32.totalorder %s1121_s10, %s1117_s9  ;;  %p104_p6 = scmp.eq.s32.totalorder %s771_s21, 31 }
  0x12   : > { %p1254_p7 = por %p98_p4, %p97_p2  ;;  %p772_p8 = scmp.ge.s32.totalorder %s1157_s19, 1 }
  0x13   : > { %p1259_p9 = por %p104_p6, %p103_p5  ;;  %p111_p10 = scmp.lt.s32.totalorder %s1157_s19, 33 }
  0x14   : > { %s1499_s25 = scalar_select %p1254_p7, 1, 0 }
  0x15   : > { %s1500_s26 = scalar_select %p1259_p9, 1, 0 }
  0x16   : > { %p1264_p11 = pnand %p772_p8, %p111_p10  ;;  %s1159_s28 = smov [#allocation6]  }
  0x17   : > { %1501 = sst [smem:[#allocation14_spill]] %s1500_s26  ;;  %s123_s29 = sshll.u32 %s1159_s28, 4  ;;  %s124_s29 = int_to_ptr.vmem [resolvable:$true] %s123_s29 }
  0x18   : > { %p868_p12 = pneg %p1264_p11  ;;  %s990_s30 = scalar_lea.vmem %s124_s29, 8192 }
  0x19   : > { %p991_p2 = scmp.ne.s32.totalorder %s124_s29, %s990_s30  ;;  %p998_p6 = scmp.lt.s32.totalorder %s124_s29, %s124_s29 }
  0x1a   : > { %p869_p13 = pnand %p868_p12, %p1239_p1  ;;  %p999_p9 = scmp.lt.s32.totalorder %s990_s30, %s990_s30 }
  0x1c   : > { %p981_p0 = pneg %p869_p13  ;;  %p1000_p7 = por %p999_p9, %p998_p6 }
  0x1e   : > { %p993_p4 = pnand %p991_p2, %p981_p0 }
  0x20   : > { %p994_p5 = pneg %p993_p4 }
  0x22   : > { %p1001_p8 = pnand %p1000_p7, %p994_p5 }
  0x24   : > { %1004 = shalt.err (!%p1001_p8)
}
  0x25   : > { %s1487_s3 = smov 256   ;;  %s1488_s4 = smov 16  }
  0x26   : > { %s1503_s1 = sld [smem:[#allocation17_spill]]  ;;  %s28_s7 = sadd.s32 1, %s1149_s17 }
  0x27   : > { %p29_p7 = scmp.ge.s32.totalorder %s28_s7, 16  ;;  %s31_s8 = sadd.s32 1, %s1153_s18 }
  0x28   : > { %s38_s12 = sadd.s32 1, %s1137_s14  ;;  %p45_p9 = scmp.ne.s32.totalorder %s1137_s14, %s1133_s13 }
  0x29   : > { %s1526_s7 = smov (%p29_p7, %s28_s7), 0  ;;  %s1528_s8 = smov (!%p29_p7, %s31_s8), %s1153_s18 }
  0x2a   : > { %1504 = sst [smem:[#allocation15_spill]] %s1526_s7  ;;  %p46_p10 = scmp.eq.s32.totalorder %s1157_s19, 0 }
  0x2b   : > { %s83_s20 = ssub.s32 %s1149_s17, %s1526_s7  ;;  %p33_p12 = scmp.ge.s32.totalorder %s1528_s8, 2 }
  0x2c   : > { %871 = dma.hbm_to_vmem [thread:$0]  (!%p869_p13), %s1503_s1, 8192, %s124_s29, [#allocation7], %s1487_s3, %s1487_s3, %s1488_s4  }
  0x2d   : > { %p881_p0 = scmp.lt.s32.totalorder %s1157_s19, 32  ;;  %p1290_p13 = por %p46_p10, %p45_p9 }
  0x2e   : > { %s137_s28 = sand.u32 1, %s1137_s14   ;;  %s1530_s8 = smov (%p33_p12, %s1528_s8), 0 }
  0x2f   : > { %1506 = sst [smem:[#allocation16_spill]] %s1530_s8  ;;  %s775_s29 = sshll.u32 %s137_s28, 8 }
  0x30   : > { %s35_s30 = ssub.s32 %s1153_s18, %s1530_s8  ;;  %s794_s6 = sshll.u32 %s1153_s18, 12 }
  0x31   : > { %p36_p2 = scmp.eq.s32.totalorder %s35_s30, 0  ;;  %s84_s5 = sor.u32 %s83_s20, %s35_s30 }
  0x32   : > { %p85_p4 = scmp.eq.s32.totalorder %s84_s5, 0  ;;  %s148_s17 = scalar_lea.hbm %s1483_s0, %s794_s6 }
  0x33   : > { %s1301_s3 = scalar_select %p36_p2, %s1137_s14, %s38_s12  }
  0x34   : > { %s1306_s4 = scalar_select %p85_p4, %s1125_s11, %s87_s23  }
  0x35   : > { %s141_s26 = scalar_lea.vmem [#allocation3], %s775_s29  ;;  %p1315_p5 = pnand %p881_p0, %p1290_p13 }
  0x36   : > { %s149_s9 = sshll.u32 %s141_s26, 4  ;;  %s138_s20 = scalar_lea.sflag [#allocation4], %s137_s28  ;;  %s150_s9 = int_to_ptr.vmem [resolvable:$true] %s149_s9 }
  0x37   : > { %p1007_p6 = pneg %p1315_p5  ;;  %s1018_s12 = scalar_lea.vmem %s150_s9, 4096 }
  0x38   : > { %p1019_p8 = scmp.ne.s32.totalorder %s150_s9, %s1018_s12  ;;  %s1162_s23 = smov [#allocation3]  }
  0x39   : > { %s1023_s1 = sshll.u32 %s1162_s23, 4  ;;  %s1024_s1 = int_to_ptr.vmem [resolvable:$false] %s1023_s1 }
  0x3a   : > { %p1021_p7 = pnand %p1019_p8, %p1007_p6  ;;  %s1025_s7 = scalar_lea.vmem %s1024_s1, 8192 }
  0x3b   : > { %p1026_p10 = scmp.lt.s32.totalorder %s150_s9, %s1024_s1  ;;  %p1027_p12 = scmp.lt.s32.totalorder %s1025_s7, %s1018_s12 }
  0x3c   : > { %p1022_p9 = pneg %p1021_p7 }
  0x3d   : > { %p1028_p2 = por %p1027_p12, %p1026_p10 }
  0x3f   : > { %p1029_p4 = pnand %p1028_p2, %p1022_p9 }
  0x41   : > { %1032 = shalt.err (!%p1029_p4)
}
  0x42   : > { %s1508_s26 = smov 16   ;;  %s1509_s21 = smov 256  }
  0x43   : > { %875 = dma.hbm_to_vmem [thread:$0]  (!%p1315_p5), %s148_s17, 4096, %s150_s9, %s138_s20, %s1509_s21, %s1509_s21, %s1508_s26  }
  0x44   : > { %161 = sbr.rel (%p1264_p11) target bundleno = 451 (0x1c3), region = 28  ;;  %s163_s28 = sand.u32 (!%p1264_p11), 1, %s1133_s13  }
  0x45   : > { %s780_s29 = sshll.u32 (!%p1264_p11), %s163_s28, 8  ;;  %s164_s30 = scalar_lea.sflag (!%p1264_p11), [#allocation4], %s163_s28 }
  0x46   : > { %s1329_s5 = scalar_lea.vmem (!%p1264_p11), [#allocation3], %s780_s29 }
  0x49   : > { %1104 = dma.done.wait (%p1248_p3), %s164_s30, 4096  }
  0x4a   : > { %1106 = vsyncadd (%p1248_p3), %s164_s30, 4294963200 }
  0x4b   : > { %1108 = dma.done.wait (%p1239_p1), [#allocation7], 8192  }
  0x4c   : > { %1110 = vsyncadd (%p1239_p1), [#allocation7], 4294959104  ;;  %s189_s9 = sand.u32 1, %s1121_s10   ;;  %p783_p11 = scmp.ne.s32.totalorder %s1141_s15, 0 }
  0x4d   : > { %s782_s17 = sshll.u32 %s189_s9, 8 }
  0x4e   : > { %s1342_s27 = scalar_lea.vmem [#allocation8], %s782_s17  ;;  %198 = sbr.rel (%p783_p11) target bundleno = 100 (0x64), region = 40 }
  0x53   : > { %v1163_v0 = vmov 0.0  }
  0x54   : > { %199 = vst [vmem:[#allocation2 + $0xb0] sm:$0xff] %v1163_v0  ;;  %200 = vst [vmem:[#allocation2] sm:$0xff] %v1163_v0 }
  0x55   : > { %201 = vst [vmem:[#allocation2 + $0xd8] sm:$0xff] %v1163_v0  ;;  %202 = vst [vmem:[#allocation2 + $0x18] sm:$0xff] %v1163_v0 }
  0x56   : > { %203 = vst [vmem:[#allocation2 + $0x50] sm:$0xff] %v1163_v0  ;;  %204 = vst [vmem:[#allocation2 + $0x68] sm:$0xff] %v1163_v0 }
  0x57   : > { %205 = vst [vmem:[#allocation2 + $0x30] sm:$0xff] %v1163_v0  ;;  %206 = vst [vmem:[#allocation2 + $0x48] sm:$0xff] %v1163_v0 }
  0x58   : > { %207 = vst [vmem:[#allocation2 + $0x80] sm:$0xff] %v1163_v0  ;;  %208 = vst [vmem:[#allocation2 + $0x88] sm:$0xff] %v1163_v0 }
  0x59   : > { %209 = vst [vmem:[#allocation2 + $0xe8] sm:$0xff] %v1163_v0  ;;  %210 = vst [vmem:[#allocation2 + $0xb8] sm:$0xff] %v1163_v0 }
  0x5a   : > { %211 = vst [vmem:[#allocation2 + $0x60] sm:$0xff] %v1163_v0  ;;  %212 = vst [vmem:[#allocation2 + $0xf0] sm:$0xff] %v1163_v0 }
  0x5b   : > { %213 = vst [vmem:[#allocation2 + $0x8] sm:$0xff] %v1163_v0  ;;  %214 = vst [vmem:[#allocation2 + $0x78] sm:$0xff] %v1163_v0 }
  0x5c   : > { %215 = vst [vmem:[#allocation2 + $0x38] sm:$0xff] %v1163_v0  ;;  %216 = vst [vmem:[#allocation2 + $0x58] sm:$0xff] %v1163_v0 }
  0x5d   : > { %217 = vst [vmem:[#allocation2 + $0x40] sm:$0xff] %v1163_v0  ;;  %218 = vst [vmem:[#allocation2 + $0xc8] sm:$0xff] %v1163_v0 }
  0x5e   : > { %219 = vst [vmem:[#allocation2 + $0xe0] sm:$0xff] %v1163_v0  ;;  %220 = vst [vmem:[#allocation2 + $0x90] sm:$0xff] %v1163_v0 }
  0x5f   : > { %221 = vst [vmem:[#allocation2 + $0x70] sm:$0xff] %v1163_v0  ;;  %222 = vst [vmem:[#allocation2 + $0xc0] sm:$0xff] %v1163_v0 }
  0x60   : > { %223 = vst [vmem:[#allocation2 + $0xa8] sm:$0xff] %v1163_v0  ;;  %224 = vst [vmem:[#allocation2 + $0xd0] sm:$0xff] %v1163_v0 }
  0x61   : > { %225 = vst [vmem:[#allocation2 + $0x10] sm:$0xff] %v1163_v0  ;;  %226 = vst [vmem:[#allocation2 + $0x28] sm:$0xff] %v1163_v0 }
  0x62   : > { %227 = vst [vmem:[#allocation2 + $0xa0] sm:$0xff] %v1163_v0  ;;  %228 = vst [vmem:[#allocation2 + $0xf8] sm:$0xff] %v1163_v0 }
  0x63   : > { %229 = vst [vmem:[#allocation2 + $0x20] sm:$0xff] %v1163_v0  ;;  %230 = vst [vmem:[#allocation2 + $0x98] sm:$0xff] %v1163_v0 }
  0x64 PF: > { %p784_p1 = scmp.ge.s32.totalorder %s1141_s15, 1 }
  0x66   : > { %234 = sbr.rel (%p784_p1) target bundleno = 399 (0x18f), region = 44 }
  0x6b   : > { %v330_v1 = vld [vmem:[#allocation6 + $0xf8] sm:$0xff]  ;;  %v329_v2 = vld [vmem:[#allocation6 + $0xf0] sm:$0xff]  ;;  %v328_v3 = vld [vmem:[#allocation6 + $0xe8] sm:$0xff] }
  0x6c   : > { %363 = vmatprep.subr.mxu0 %v330_v1  ;;  %796 = vmatprep.subr.mxu1 %v330_v1  ;;  %v327_v4 = vld [vmem:[#allocation6 + $0xe0] sm:$0xff]  ;;  %v326_v5 = vld [vmem:[#allocation6 + $0xd8] sm:$0xff]  ;;  %v325_v6 = vld [vmem:[#allocation6 + $0xd0] sm:$0xff] }
  0x6d   : > { %364 = vmatpush1.msra.mxu0 %v329_v2  ;;  %828 = vmatpush1.msra.mxu1 %v329_v2  ;;  %v324_v7 = vld [vmem:[#allocation6 + $0xc8] sm:$0xff]  ;;  %v323_v8 = vld [vmem:[#allocation6 + $0xc0] sm:$0xff]  ;;  %v322_v9 = vld [vmem:[#allocation6 + $0xb8] sm:$0xff] }
  0x6e   : > { %365 = vmatprep.subr.mxu0 %v328_v3  ;;  %797 = vmatprep.subr.mxu1 %v328_v3  ;;  %v321_v10 = vld [vmem:[#allocation6 + $0xb0] sm:$0xff]  ;;  %v320_v11 = vld [vmem:[#allocation6 + $0xa8] sm:$0xff]  ;;  %v319_v12 = vld [vmem:[#allocation6 + $0xa0] sm:$0xff] }
  0x6f   : > { %366 = vmatpush1.msra.mxu0 %v327_v4  ;;  %829 = vmatpush1.msra.mxu1 %v327_v4  ;;  %v318_v13 = vld [vmem:[#allocation6 + $0x98] sm:$0xff]  ;;  %v317_v14 = vld [vmem:[#allocation6 + $0x90] sm:$0xff]  ;;  %v316_v15 = vld [vmem:[#allocation6 + $0x88] sm:$0xff] }
  0x70   : > { %367 = vmatprep.subr.mxu0 %v326_v5  ;;  %798 = vmatprep.subr.mxu1 %v326_v5  ;;  %v315_v16 = vld [vmem:[#allocation6 + $0x80] sm:$0xff]  ;;  %v314_v17 = vld [vmem:[#allocation6 + $0x78] sm:$0xff]  ;;  %v313_v18 = vld [vmem:[#allocation6 + $0x70] sm:$0xff] }
  0x71   : > { %368 = vmatpush1.msra.mxu0 %v325_v6  ;;  %830 = vmatpush1.msra.mxu1 %v325_v6  ;;  %v312_v19 = vld [vmem:[#allocation6 + $0x68] sm:$0xff]  ;;  %v311_v20 = vld [vmem:[#allocation6 + $0x60] sm:$0xff]  ;;  %v310_v21 = vld [vmem:[#allocation6 + $0x58] sm:$0xff] }
  0x72   : > { %369 = vmatprep.subr.mxu0 %v324_v7  ;;  %799 = vmatprep.subr.mxu1 %v324_v7  ;;  %v309_v22 = vld [vmem:[#allocation6 + $0x50] sm:$0xff]  ;;  %v308_v23 = vld [vmem:[#allocation6 + $0x48] sm:$0xff]  ;;  %v307_v24 = vld [vmem:[#allocation6 + $0x40] sm:$0xff] }
  0x73   : > { %370 = vmatpush1.msra.mxu0 %v323_v8  ;;  %831 = vmatpush1.msra.mxu1 %v323_v8  ;;  %v306_v25 = vld [vmem:[#allocation6 + $0x38] sm:$0xff]  ;;  %v305_v26 = vld [vmem:[#allocation6 + $0x30] sm:$0xff]  ;;  %v304_v27 = vld [vmem:[#allocation6 + $0x28] sm:$0xff] }
  0x74   : > { %371 = vmatprep.subr.mxu0 %v322_v9  ;;  %800 = vmatprep.subr.mxu1 %v322_v9  ;;  %v303_v28 = vld [vmem:[#allocation6 + $0x20] sm:$0xff]  ;;  %v302_v29 = vld [vmem:[#allocation6 + $0x18] sm:$0xff]  ;;  %v301_v30 = vld [vmem:[#allocation6 + $0x10] sm:$0xff] }
  0x75   : > { %372 = vmatpush1.msra.mxu0 %v321_v10  ;;  %832 = vmatpush1.msra.mxu1 %v321_v10  ;;  %v300_v31 = vld [vmem:[#allocation6 + $0x8] sm:$0xff]  ;;  %v299_v32 = vld [vmem:[#allocation6] sm:$0xff]  ;;  %v362_v33 = vld [vmem:[#allocation6 + $0x1f8] sm:$0xff] }
  0x76   : > { %373 = vmatprep.subr.mxu0 %v320_v11  ;;  %801 = vmatprep.subr.mxu1 %v320_v11  ;;  %v361_v34 = vld [vmem:[#allocation6 + $0x1f0] sm:$0xff]  ;;  %v360_v35 = vld [vmem:[#allocation6 + $0x1e8] sm:$0xff]  ;;  %v359_v36 = vld [vmem:[#allocation6 + $0x1e0] sm:$0xff] }
  0x77   : > { %374 = vmatpush1.msra.mxu0 %v319_v12  ;;  %833 = vmatpush1.msra.mxu1 %v319_v12  ;;  %v358_v37 = vld [vmem:[#allocation6 + $0x1d8] sm:$0xff]  ;;  %v357_v38 = vld [vmem:[#allocation6 + $0x1d0] sm:$0xff]  ;;  %v356_v39 = vld [vmem:[#allocation6 + $0x1c8] sm:$0xff] }
  0x78   : > { %375 = vmatprep.subr.mxu0 %v318_v13  ;;  %802 = vmatprep.subr.mxu1 %v318_v13  ;;  %v355_v40 = vld [vmem:[#allocation6 + $0x1c0] sm:$0xff]  ;;  %v354_v41 = vld [vmem:[#allocation6 + $0x1b8] sm:$0xff]  ;;  %v353_v42 = vld [vmem:[#allocation6 + $0x1b0] sm:$0xff] }
  0x79   : > { %376 = vmatpush1.msra.mxu0 %v317_v14  ;;  %834 = vmatpush1.msra.mxu1 %v317_v14  ;;  %v352_v43 = vld [vmem:[#allocation6 + $0x1a8] sm:$0xff]  ;;  %v351_v44 = vld [vmem:[#allocation6 + $0x1a0] sm:$0xff]  ;;  %v350_v45 = vld [vmem:[#allocation6 + $0x198] sm:$0xff] }
  0x7a   : > { %377 = vmatprep.subr.mxu0 %v316_v15  ;;  %803 = vmatprep.subr.mxu1 %v316_v15  ;;  %v349_v46 = vld [vmem:[#allocation6 + $0x190] sm:$0xff]  ;;  %v348_v47 = vld [vmem:[#allocation6 + $0x188] sm:$0xff]  ;;  %v347_v48 = vld [vmem:[#allocation6 + $0x180] sm:$0xff] }
  0x7b   : > { %378 = vmatpush1.msra.mxu0 %v315_v16  ;;  %835 = vmatpush1.msra.mxu1 %v315_v16  ;;  %v346_v49 = vld [vmem:[#allocation6 + $0x178] sm:$0xff]  ;;  %v345_v50 = vld [vmem:[#allocation6 + $0x170] sm:$0xff]  ;;  %v344_v51 = vld [vmem:[#allocation6 + $0x168] sm:$0xff] }
  0x7c   : > { %379 = vmatprep.subr.mxu0 %v314_v17  ;;  %804 = vmatprep.subr.mxu1 %v314_v17  ;;  %v343_v52 = vld [vmem:[#allocation6 + $0x160] sm:$0xff]  ;;  %v342_v53 = vld [vmem:[#allocation6 + $0x158] sm:$0xff]  ;;  %v341_v54 = vld [vmem:[#allocation6 + $0x150] sm:$0xff] }
  0x7d   : > { %380 = vmatpush1.msra.mxu0 %v313_v18  ;;  %836 = vmatpush1.msra.mxu1 %v313_v18  ;;  %v340_v55 = vld [vmem:[#allocation6 + $0x148] sm:$0xff]  ;;  %v339_v56 = vld [vmem:[#allocation6 + $0x140] sm:$0xff]  ;;  %v338_v57 = vld [vmem:[#allocation6 + $0x138] sm:$0xff] }
  0x7e   : > { %381 = vmatprep.subr.mxu0 %v312_v19  ;;  %805 = vmatprep.subr.mxu1 %v312_v19  ;;  %v337_v58 = vld [vmem:[#allocation6 + $0x130] sm:$0xff]  ;;  %v336_v59 = vld [vmem:[#allocation6 + $0x128] sm:$0xff]  ;;  %v335_v60 = vld [vmem:[#allocation6 + $0x120] sm:$0xff] }
  0x7f   : > { %382 = vmatpush1.msra.mxu0 %v311_v20  ;;  %837 = vmatpush1.msra.mxu1 %v311_v20  ;;  %v334_v61 = vld [vmem:[#allocation6 + $0x118] sm:$0xff]  ;;  %v333_v62 = vld [vmem:[#allocation6 + $0x110] sm:$0xff]  ;;  %v332_v63 = vld [vmem:[#allocation6 + $0x108] sm:$0xff] }
  0x80   : > { %383 = vmatprep.subr.mxu0 %v310_v21  ;;  %806 = vmatprep.subr.mxu1 %v310_v21  ;;  %v331_v0 = vld [vmem:[#allocation6 + $0x100] sm:$0xff]  ;;  %v268_v1 = vld [vmem:[%s1329_s5 + $0x8] sm:$0xff]  ;;  %v270_v5 = vld [vmem:[%s1329_s5 + $0x18] sm:$0xff] }
  0x81   : > { %384 = vmatpush1.msra.mxu0 %v309_v22  ;;  %838 = vmatpush1.msra.mxu1 %v309_v22  ;;  %v284_v2 = vld [vmem:[%s1329_s5 + $0x88] sm:$0xff]  ;;  %v267_v3 = vld [vmem:[%s1329_s5] sm:$0xff]  ;;  %v286_v6 = vld [vmem:[%s1329_s5 + $0x98] sm:$0xff] }
  0x82   : > { %385 = vmatprep.subr.mxu0 %v308_v23  ;;  %807 = vmatprep.subr.mxu1 %v308_v23  ;;  %v283_v4 = vld [vmem:[%s1329_s5 + $0x80] sm:$0xff]  ;;  %v269_v7 = vld [vmem:[%s1329_s5 + $0x10] sm:$0xff]  ;;  %v272_v9 = vld [vmem:[%s1329_s5 + $0x28] sm:$0xff] }
  0x83   : > { %386 = vmatpush1.msra.mxu0 %v307_v24  ;;  %839 = vmatpush1.msra.mxu1 %v307_v24  ;;  %v285_v8 = vld [vmem:[%s1329_s5 + $0x90] sm:$0xff]  ;;  %v288_v10 = vld [vmem:[%s1329_s5 + $0xa8] sm:$0xff]  ;;  %v271_v11 = vld [vmem:[%s1329_s5 + $0x20] sm:$0xff] }
  0x84   : > { %387 = vmatprep.subr.mxu0 %v306_v25  ;;  %808 = vmatprep.subr.mxu1 %v306_v25  ;;  %v287_v12 = vld [vmem:[%s1329_s5 + $0xa0] sm:$0xff]  ;;  %v274_v13 = vld [vmem:[%s1329_s5 + $0x38] sm:$0xff]  ;;  %v273_v15 = vld [vmem:[%s1329_s5 + $0x30] sm:$0xff] }
  0x85   : > { %388 = vmatpush1.msra.mxu0 %v305_v26  ;;  %840 = vmatpush1.msra.mxu1 %v305_v26  ;;  %v290_v14 = vld [vmem:[%s1329_s5 + $0xb8] sm:$0xff]  ;;  %v289_v16 = vld [vmem:[%s1329_s5 + $0xb0] sm:$0xff]  ;;  %v276_v17 = vld [vmem:[%s1329_s5 + $0x48] sm:$0xff] }
  0x86   : > { %389 = vmatprep.subr.mxu0 %v304_v27  ;;  %809 = vmatprep.subr.mxu1 %v304_v27  ;;  %v292_v18 = vld [vmem:[%s1329_s5 + $0xc8] sm:$0xff]  ;;  %v275_v19 = vld [vmem:[%s1329_s5 + $0x40] sm:$0xff]  ;;  %v278_v21 = vld [vmem:[%s1329_s5 + $0x58] sm:$0xff] }
  0x87   : > { %390 = vmatpush1.msra.mxu0 %v303_v28  ;;  %841 = vmatpush1.msra.mxu1 %v303_v28  ;;  %v291_v20 = vld [vmem:[%s1329_s5 + $0xc0] sm:$0xff]  ;;  %v294_v22 = vld [vmem:[%s1329_s5 + $0xd8] sm:$0xff]  ;;  %v277_v23 = vld [vmem:[%s1329_s5 + $0x50] sm:$0xff] }
  0x88   : > { %391 = vmatprep.subr.mxu0 %v302_v29  ;;  %810 = vmatprep.subr.mxu1 %v302_v29  ;;  %v293_v24 = vld [vmem:[%s1329_s5 + $0xd0] sm:$0xff]  ;;  %v280_v25 = vld [vmem:[%s1329_s5 + $0x68] sm:$0xff]  ;;  %v279_v27 = vld [vmem:[%s1329_s5 + $0x60] sm:$0xff] }
  0x89   : > { %392 = vmatpush1.msra.mxu0 %v301_v30  ;;  %842 = vmatpush1.msra.mxu1 %v301_v30  ;;  %v296_v26 = vld [vmem:[%s1329_s5 + $0xe8] sm:$0xff]  ;;  %v295_v28 = vld [vmem:[%s1329_s5 + $0xe0] sm:$0xff]  ;;  %v282_v29 = vld [vmem:[%s1329_s5 + $0x78] sm:$0xff] }
  0x8a   : > { %393 = vmatprep.subr.mxu0 %v300_v31  ;;  %811 = vmatprep.subr.mxu1 %v300_v31  ;;  %v298_v30 = vld [vmem:[%s1329_s5 + $0xf8] sm:$0xff]  ;;  %v281_v31 = vld [vmem:[%s1329_s5 + $0x70] sm:$0xff] }
  0x8b   : > { %394 = vmatpush1.msra.mxu0 %v299_v32  ;;  %843 = vmatpush1.msra.mxu1 %v299_v32  ;;  %v297_v32 = vld [vmem:[%s1329_s5 + $0xf0] sm:$0xff] }
  0x8c   : > { %395 = vmatprep.subr.mxu0 %v362_v33  ;;  %812 = vmatprep.subr.mxu1 %v362_v33  ;;  %v235_v33 = vld [vmem:[#allocation2 + $0xb0] sm:$0xff] }
  0x8d   : > { %396 = vmatpush2.msra.mxu0 %v361_v34  ;;  %844 = vmatpush2.msra.mxu1 %v361_v34  ;;  %v251_v34 = vld [vmem:[#allocation2 + $0x38] sm:$0xff] }
  0x8e   : > { %397 = vmatprep.subr.mxu0 %v360_v35  ;;  %813 = vmatprep.subr.mxu1 %v360_v35 }
  0x8f   : > { %398 = vmatpush2.msra.mxu0 %v359_v36  ;;  %845 = vmatpush2.msra.mxu1 %v359_v36 }
  0x90   : > { %399 = vmatprep.subr.mxu0 %v358_v37  ;;  %814 = vmatprep.subr.mxu1 %v358_v37  ;;  %v236_v37 = vld [vmem:[#allocation2] sm:$0xff] }
  0x91   : > { %400 = vmatpush2.msra.mxu0 %v357_v38  ;;  %846 = vmatpush2.msra.mxu1 %v357_v38  ;;  %v252_v38 = vld [vmem:[#allocation2 + $0x58] sm:$0xff] }
  0x92   : > { %401 = vmatprep.subr.mxu0 %v356_v39  ;;  %815 = vmatprep.subr.mxu1 %v356_v39 }
  0x93   : > { %402 = vmatpush2.msra.mxu0 %v355_v40  ;;  %847 = vmatpush2.msra.mxu1 %v355_v40 }
  0x94   : > { %403 = vmatprep.subr.mxu0 %v354_v41  ;;  %816 = vmatprep.subr.mxu1 %v354_v41 }
  0x95   : > { %404 = vmatpush2.msra.mxu0 %v353_v42  ;;  %848 = vmatpush2.msra.mxu1 %v353_v42 }
  0x96   : > { %405 = vmatprep.subr.mxu0 %v352_v43  ;;  %817 = vmatprep.subr.mxu1 %v352_v43  ;;  %v237_v43 = vld [vmem:[#allocation2 + $0xd8] sm:$0xff] }
  0x97   : > { %406 = vmatpush2.msra.mxu0 %v351_v44  ;;  %849 = vmatpush2.msra.mxu1 %v351_v44  ;;  %v253_v44 = vld [vmem:[#allocation2 + $0x40] sm:$0xff] }
  0x98   : > { %407 = vmatprep.subr.mxu0 %v350_v45  ;;  %818 = vmatprep.subr.mxu1 %v350_v45 }
  0x99   : > { %408 = vmatpush2.msra.mxu0 %v349_v46  ;;  %850 = vmatpush2.msra.mxu1 %v349_v46 }
  0x9a   : > { %409 = vmatprep.subr.mxu0 %v348_v47  ;;  %819 = vmatprep.subr.mxu1 %v348_v47 }
  0x9b   : > { %410 = vmatpush2.msra.mxu0 %v347_v48  ;;  %851 = vmatpush2.msra.mxu1 %v347_v48 }
  0x9c   : > { %411 = vmatprep.subr.mxu0 %v346_v49  ;;  %820 = vmatprep.subr.mxu1 %v346_v49  ;;  %v238_v49 = vld [vmem:[#allocation2 + $0x18] sm:$0xff] }
  0x9d   : > { %412 = vmatpush2.msra.mxu0 %v345_v50  ;;  %852 = vmatpush2.msra.mxu1 %v345_v50  ;;  %v254_v50 = vld [vmem:[#allocation2 + $0xc8] sm:$0xff] }
  0x9e   : > { %413 = vmatprep.subr.mxu0 %v344_v51  ;;  %821 = vmatprep.subr.mxu1 %v344_v51 }
  0x9f   : > { %414 = vmatpush2.msra.mxu0 %v343_v52  ;;  %853 = vmatpush2.msra.mxu1 %v343_v52 }
  0xa0   : > { %415 = vmatprep.subr.mxu0 %v342_v53  ;;  %822 = vmatprep.subr.mxu1 %v342_v53 }
  0xa1   : > { %416 = vmatpush2.msra.mxu0 %v341_v54  ;;  %854 = vmatpush2.msra.mxu1 %v341_v54 }
  0xa2   : > { %417 = vmatprep.subr.mxu0 %v340_v55  ;;  %823 = vmatprep.subr.mxu1 %v340_v55  ;;  %v239_v55 = vld [vmem:[#allocation2 + $0x50] sm:$0xff] }
  0xa3   : > { %418 = vmatpush2.msra.mxu0 %v339_v56  ;;  %855 = vmatpush2.msra.mxu1 %v339_v56  ;;  %v255_v56 = vld [vmem:[#allocation2 + $0xe0] sm:$0xff] }
  0xa4   : > { %419 = vmatprep.subr.mxu0 %v338_v57  ;;  %824 = vmatprep.subr.mxu1 %v338_v57 }
  0xa5   : > { %420 = vmatpush2.msra.mxu0 %v337_v58  ;;  %856 = vmatpush2.msra.mxu1 %v337_v58 }
  0xa6   : > { %421 = vmatprep.subr.mxu0 %v336_v59  ;;  %825 = vmatprep.subr.mxu1 %v336_v59 }
  0xa7   : > { %422 = vmatpush2.msra.mxu0 %v335_v60  ;;  %857 = vmatpush2.msra.mxu1 %v335_v60 }
  0xa8   : > { %423 = vmatprep.subr.mxu0 %v334_v61  ;;  %826 = vmatprep.subr.mxu1 %v334_v61  ;;  %v240_v61 = vld [vmem:[#allocation2 + $0x68] sm:$0xff] }
  0xa9   : > { %424 = vmatpush2.msra.mxu0 %v333_v62  ;;  %858 = vmatpush2.msra.mxu1 %v333_v62  ;;  %v256_v62 = vld [vmem:[#allocation2 + $0x90] sm:$0xff] }
  0xaa   : > { %425 = vmatprep.subr.mxu0 %v332_v63  ;;  %827 = vmatprep.subr.mxu1 %v332_v63 }
  0xab   : > { %426 = vmatpush2.msra.mxu0 %v331_v0  ;;  %859 = vmatpush2.msra.mxu1 %v331_v0 }
  0xac   : > { %427 = vmatprep.mubr.f32.mxu0 %v268_v1  ;;  %475 = vmatprep.mubr.f32.mxu1 %v284_v2 }
  0xad   : > { %428 = vmatmul.mubr.f32.vlgmr.msra.gmra.mxu0 %v267_v3  ;;  %476 = vmatmul.mubr.f32.vlgmr.msra.gmra.mxu1 %v283_v4  ;;  %v241_v3 = vld [vmem:[#allocation2 + $0x30] sm:$0xff] }
  0xae   : > { %433 = vmatprep.mubr.f32.mxu0 %v270_v5  ;;  %481 = vmatprep.mubr.f32.mxu1 %v286_v6  ;;  %v257_v4 = vld [vmem:[#allocation2 + $0x70] sm:$0xff] }
  0xb1   : > { %434 = vmatmul.mubr.f32.gmra.mxu0 %v269_v7  ;;  %482 = vmatmul.mubr.f32.gmra.mxu1 %v285_v8 }
  0xb2   : > { %439 = vmatprep.mubr.f32.mxu0 %v272_v9  ;;  %487 = vmatprep.mubr.f32.mxu1 %v288_v10  ;;  %v242_v9 = vld [vmem:[#allocation2 + $0x48] sm:$0xff]  ;;  %v258_v10 = vld [vmem:[#allocation2 + $0xc0] sm:$0xff] }
  0xb5   : > { %440 = vmatmul.mubr.f32.gmra.mxu0 %v271_v11  ;;  %488 = vmatmul.mubr.f32.gmra.mxu1 %v287_v12 }
  0xb6   : > { %445 = vmatprep.mubr.f32.mxu0 %v274_v13  ;;  %493 = vmatprep.mubr.f32.mxu1 %v290_v14 }
  0xb9   : > { %446 = vmatmul.mubr.f32.gmra.mxu0 %v273_v15  ;;  %494 = vmatmul.mubr.f32.gmra.mxu1 %v289_v16  ;;  %v243_v15 = vld [vmem:[#allocation2 + $0x80] sm:$0xff]  ;;  %v259_v16 = vld [vmem:[#allocation2 + $0xa8] sm:$0xff] }
  0xba   : > { %451 = vmatprep.mubr.f32.mxu0 %v276_v17  ;;  %499 = vmatprep.mubr.f32.mxu1 %v292_v18 }
  0xbd   : > { %452 = vmatmul.mubr.f32.gmra.mxu0 %v275_v19  ;;  %500 = vmatmul.mubr.f32.gmra.mxu1 %v291_v20 }
  0xbe   : > { %457 = vmatprep.mubr.f32.mxu0 %v278_v21  ;;  %505 = vmatprep.mubr.f32.mxu1 %v294_v22  ;;  %v244_v21 = vld [vmem:[#allocation2 + $0x88] sm:$0xff]  ;;  %v260_v22 = vld [vmem:[#allocation2 + $0xd0] sm:$0xff] }
  0xc1   : > { %458 = vmatmul.mubr.f32.gmra.mxu0 %v277_v23  ;;  %506 = vmatmul.mubr.f32.gmra.mxu1 %v293_v24 }
  0xc2   : > { %463 = vmatprep.mubr.f32.mxu0 %v280_v25  ;;  %511 = vmatprep.mubr.f32.mxu1 %v296_v26 }
  0xc5   : > { %464 = vmatmul.mubr.f32.gmra.mxu0 %v279_v27  ;;  %512 = vmatmul.mubr.f32.gmra.mxu1 %v295_v28  ;;  %v245_v27 = vld [vmem:[#allocation2 + $0xe8] sm:$0xff]  ;;  %v261_v28 = vld [vmem:[#allocation2 + $0x10] sm:$0xff] }
  0xc6   : > { %469 = vmatprep.mubr.f32.mxu0 %v282_v29  ;;  %517 = vmatprep.mubr.f32.mxu1 %v298_v30 }
  0xc9   : > { %470 = vmatmul.mubr.f32.gmra.mxu0 %v281_v31  ;;  %518 = vmatmul.mubr.f32.gmra.mxu1 %v297_v32 }
 0x16d   : > { %v429_v35 = vpop.f32.mrf.mxu0  ;;  %v477_v36 = vpop.f32.mrf.mxu1 }
 0x16e   : > { %v524_v39 = vadd.f32 %v429_v35, %v235_v33  ;;  %v540_v40 = vadd.f32 %v477_v36, %v251_v34  ;;  %v246_v33 = vld [vmem:[#allocation2 + $0xb8] sm:$0xff]  ;;  %v262_v34 = vld [vmem:[#allocation2 + $0x28] sm:$0xff] }
 0x16f   : > { %v431_v41 = vpop.f32.mrf.mxu0  ;;  %v479_v42 = vpop.f32.mrf.mxu1 }
 0x170   : > { %556 = vst [vmem:[#allocation2 + $0xb0] sm:$0xff] %v524_v39  ;;  %572 = vst [vmem:[#allocation2 + $0x38] sm:$0xff] %v540_v40  ;;  %v525_v45 = vadd.f32 %v431_v41, %v236_v37  ;;  %v541_v46 = vadd.f32 %v479_v42, %v252_v38  ;;  %v247_v39 = vld [vmem:[#allocation2 + $0x60] sm:$0xff] }
 0x171   : > { %v435_v47 = vpop.f32.mrf.mxu0  ;;  %v483_v48 = vpop.f32.mrf.mxu1  ;;  %v263_v40 = vld [vmem:[#allocation2 + $0xa0] sm:$0xff] }
 0x172   : > { %557 = vst [vmem:[#allocation2] sm:$0xff] %v525_v45  ;;  %573 = vst [vmem:[#allocation2 + $0x58] sm:$0xff] %v541_v46  ;;  %v526_v51 = vadd.f32 %v435_v47, %v237_v43  ;;  %v542_v52 = vadd.f32 %v483_v48, %v253_v44  ;;  %v248_v45 = vld [vmem:[#allocation2 + $0xf0] sm:$0xff]  ;;  %v264_v46 = vld [vmem:[#allocation2 + $0xf8] sm:$0xff] }
 0x173   : > { %v437_v53 = vpop.f32.mrf.mxu0  ;;  %v485_v54 = vpop.f32.mrf.mxu1 }
 0x174   : > { %558 = vst [vmem:[#allocation2 + $0xd8] sm:$0xff] %v526_v51  ;;  %574 = vst [vmem:[#allocation2 + $0x40] sm:$0xff] %v542_v52  ;;  %v527_v57 = vadd.f32 %v437_v53, %v238_v49  ;;  %v543_v58 = vadd.f32 %v485_v54, %v254_v50  ;;  %v249_v51 = vld [vmem:[#allocation2 + $0x8] sm:$0xff]  ;;  %v265_v52 = vld [vmem:[#allocation2 + $0x20] sm:$0xff] }
 0x175   : > { %v441_v59 = vpop.f32.mrf.mxu0  ;;  %v489_v60 = vpop.f32.mrf.mxu1 }
 0x176   : > { %559 = vst [vmem:[#allocation2 + $0x18] sm:$0xff] %v527_v57  ;;  %575 = vst [vmem:[#allocation2 + $0xc8] sm:$0xff] %v543_v58  ;;  %v528_v63 = vadd.f32 %v441_v59, %v239_v55  ;;  %v544_v0 = vadd.f32 %v489_v60, %v255_v56  ;;  %v250_v57 = vld [vmem:[#allocation2 + $0x78] sm:$0xff] }
 0x177   : > { %v443_v1 = vpop.f32.mrf.mxu0  ;;  %v491_v2 = vpop.f32.mrf.mxu1  ;;  %v266_v58 = vld [vmem:[#allocation2 + $0x98] sm:$0xff] }
 0x178   : > { %560 = vst [vmem:[#allocation2 + $0x50] sm:$0xff] %v528_v63  ;;  %576 = vst [vmem:[#allocation2 + $0xe0] sm:$0xff] %v544_v0  ;;  %v529_v5 = vadd.f32 %v443_v1, %v240_v61  ;;  %v545_v6 = vadd.f32 %v491_v2, %v256_v62 }
 0x179   : > { %v447_v7 = vpop.f32.mrf.mxu0  ;;  %v495_v8 = vpop.f32.mrf.mxu1 }
 0x17a   : > { %561 = vst [vmem:[#allocation2 + $0x68] sm:$0xff] %v529_v5  ;;  %577 = vst [vmem:[#allocation2 + $0x90] sm:$0xff] %v545_v6  ;;  %v530_v11 = vadd.f32 %v447_v7, %v241_v3  ;;  %v546_v12 = vadd.f32 %v495_v8, %v257_v4 }
 0x17b   : > { %v449_v13 = vpop.f32.mrf.mxu0  ;;  %v497_v14 = vpop.f32.mrf.mxu1 }
 0x17c   : > { %562 = vst [vmem:[#allocation2 + $0x30] sm:$0xff] %v530_v11  ;;  %578 = vst [vmem:[#allocation2 + $0x70] sm:$0xff] %v546_v12  ;;  %v531_v17 = vadd.f32 %v449_v13, %v242_v9  ;;  %v547_v18 = vadd.f32 %v497_v14, %v258_v10 }
 0x17d   : > { %v453_v19 = vpop.f32.mrf.mxu0  ;;  %v501_v20 = vpop.f32.mrf.mxu1 }
 0x17e   : > { %563 = vst [vmem:[#allocation2 + $0x48] sm:$0xff] %v531_v17  ;;  %579 = vst [vmem:[#allocation2 + $0xc0] sm:$0xff] %v547_v18  ;;  %v532_v23 = vadd.f32 %v453_v19, %v243_v15  ;;  %v548_v24 = vadd.f32 %v501_v20, %v259_v16 }
 0x17f   : > { %v455_v25 = vpop.f32.mrf.mxu0  ;;  %v503_v26 = vpop.f32.mrf.mxu1 }
 0x180   : > { %564 = vst [vmem:[#allocation2 + $0x80] sm:$0xff] %v532_v23  ;;  %580 = vst [vmem:[#allocation2 + $0xa8] sm:$0xff] %v548_v24  ;;  %v533_v29 = vadd.f32 %v455_v25, %v244_v21  ;;  %v549_v30 = vadd.f32 %v503_v26, %v260_v22 }
 0x181   : > { %v459_v31 = vpop.f32.mrf.mxu0  ;;  %v507_v32 = vpop.f32.mrf.mxu1 }
 0x182   : > { %565 = vst [vmem:[#allocation2 + $0x88] sm:$0xff] %v533_v29  ;;  %581 = vst [vmem:[#allocation2 + $0xd0] sm:$0xff] %v549_v30  ;;  %v534_v35 = vadd.f32 %v459_v31, %v245_v27  ;;  %v550_v36 = vadd.f32 %v507_v32, %v261_v28 }
 0x183   : > { %v461_v37 = vpop.f32.mrf.mxu0  ;;  %v509_v38 = vpop.f32.mrf.mxu1 }
 0x184   : > { %566 = vst [vmem:[#allocation2 + $0xe8] sm:$0xff] %v534_v35  ;;  %582 = vst [vmem:[#allocation2 + $0x10] sm:$0xff] %v550_v36  ;;  %v535_v41 = vadd.f32 %v461_v37, %v246_v33  ;;  %v551_v42 = vadd.f32 %v509_v38, %v262_v34 }
 0x185   : > { %v465_v43 = vpop.f32.mrf.mxu0  ;;  %v513_v44 = vpop.f32.mrf.mxu1 }
 0x186   : > { %567 = vst [vmem:[#allocation2 + $0xb8] sm:$0xff] %v535_v41  ;;  %583 = vst [vmem:[#allocation2 + $0x28] sm:$0xff] %v551_v42  ;;  %v536_v47 = vadd.f32 %v465_v43, %v247_v39  ;;  %v552_v48 = vadd.f32 %v513_v44, %v263_v40 }
 0x187   : > { %v467_v49 = vpop.f32.mrf.mxu0  ;;  %v515_v50 = vpop.f32.mrf.mxu1 }
 0x188   : > { %568 = vst [vmem:[#allocation2 + $0x60] sm:$0xff] %v536_v47  ;;  %584 = vst [vmem:[#allocation2 + $0xa0] sm:$0xff] %v552_v48  ;;  %v537_v53 = vadd.f32 %v467_v49, %v248_v45  ;;  %v553_v54 = vadd.f32 %v515_v50, %v264_v46 }
 0x189   : > { %v471_v55 = vpop.f32.mrf.mxu0  ;;  %v519_v56 = vpop.f32.mrf.mxu1 }
 0x18a   : > { %569 = vst [vmem:[#allocation2 + $0xf0] sm:$0xff] %v537_v53  ;;  %585 = vst [vmem:[#allocation2 + $0xf8] sm:$0xff] %v553_v54  ;;  %v538_v59 = vadd.f32 %v471_v55, %v249_v51  ;;  %v554_v60 = vadd.f32 %v519_v56, %v265_v52 }
 0x18b   : > { %v473_v61 = vpop.f32.mrf.mxu0  ;;  %v521_v62 = vpop.f32.mrf.mxu1 }
 0x18c   : > { %570 = vst [vmem:[#allocation2 + $0x8] sm:$0xff] %v538_v59  ;;  %586 = vst [vmem:[#allocation2 + $0x20] sm:$0xff] %v554_v60  ;;  %v539_v63 = vadd.f32 %v473_v61, %v250_v57  ;;  %v555_v0 = vadd.f32 %v521_v62, %v266_v58 }
 0x18e   : > { %571 = vst [vmem:[#allocation2 + $0x78] sm:$0xff] %v539_v63  ;;  %587 = vst [vmem:[#allocation2 + $0x98] sm:$0xff] %v555_v0 }
 0x18f PF: > { %p785_p3 = scmp.lt.s32.totalorder %s1141_s15, 0 }
 0x191   : > { %591 = sbr.rel (%p785_p3) target bundleno = 423 (0x1a7), region = 48 }
 0x196   : > { %v592_v1 = vld [vmem:[#allocation2 + $0xb0] sm:$0xff]  ;;  %v593_v2 = vld [vmem:[#allocation2] sm:$0xff]  ;;  %v594_v3 = vld [vmem:[#allocation2 + $0xd8] sm:$0xff] }
 0x197   : > { %624 = vst [vmem:[%s1342_s27] sm:$0xff] %v592_v1  ;;  %625 = vst [vmem:[%s1342_s27 + $0x8] sm:$0xff] %v593_v2  ;;  %v595_v4 = vld [vmem:[#allocation2 + $0x18] sm:$0xff]  ;;  %v596_v5 = vld [vmem:[#allocation2 + $0x50] sm:$0xff] }
 0x198   : > { %626 = vst [vmem:[%s1342_s27 + $0x10] sm:$0xff] %v594_v3  ;;  %v597_v6 = vld [vmem:[#allocation2 + $0x68] sm:$0xff]  ;;  %627 = vst [vmem:[%s1342_s27 + $0x18] sm:$0xff] %v595_v4  ;;  %v598_v7 = vld [vmem:[#allocation2 + $0x30] sm:$0xff] }
 0x199   : > { %628 = vst [vmem:[%s1342_s27 + $0x20] sm:$0xff] %v596_v5  ;;  %629 = vst [vmem:[%s1342_s27 + $0x28] sm:$0xff] %v597_v6  ;;  %v599_v8 = vld [vmem:[#allocation2 + $0x48] sm:$0xff]  ;;  %v600_v9 = vld [vmem:[#allocation2 + $0x80] sm:$0xff] }
 0x19a   : > { %630 = vst [vmem:[%s1342_s27 + $0x30] sm:$0xff] %v598_v7  ;;  %631 = vst [vmem:[%s1342_s27 + $0x38] sm:$0xff] %v599_v8  ;;  %v601_v10 = vld [vmem:[#allocation2 + $0x88] sm:$0xff]  ;;  %v603_v12 = vld [vmem:[#allocation2 + $0xb8] sm:$0xff] }
 0x19b   : > { %632 = vst [vmem:[%s1342_s27 + $0x40] sm:$0xff] %v600_v9  ;;  %v602_v11 = vld [vmem:[#allocation2 + $0xe8] sm:$0xff]  ;;  %633 = vst [vmem:[%s1342_s27 + $0x48] sm:$0xff] %v601_v10  ;;  %v604_v13 = vld [vmem:[#allocation2 + $0x60] sm:$0xff] }
 0x19c   : > { %634 = vst [vmem:[%s1342_s27 + $0x50] sm:$0xff] %v602_v11  ;;  %635 = vst [vmem:[%s1342_s27 + $0x58] sm:$0xff] %v603_v12  ;;  %v605_v14 = vld [vmem:[#allocation2 + $0xf0] sm:$0xff]  ;;  %v606_v15 = vld [vmem:[#allocation2 + $0x8] sm:$0xff] }
 0x19d   : > { %636 = vst [vmem:[%s1342_s27 + $0x60] sm:$0xff] %v604_v13  ;;  %637 = vst [vmem:[%s1342_s27 + $0x68] sm:$0xff] %v605_v14  ;;  %v607_v16 = vld [vmem:[#allocation2 + $0x78] sm:$0xff]  ;;  %v610_v19 = vld [vmem:[#allocation2 + $0x40] sm:$0xff] }
 0x19e   : > { %638 = vst [vmem:[%s1342_s27 + $0x70] sm:$0xff] %v606_v15  ;;  %v608_v17 = vld [vmem:[#allocation2 + $0x38] sm:$0xff]  ;;  %639 = vst [vmem:[%s1342_s27 + $0x78] sm:$0xff] %v607_v16  ;;  %v611_v20 = vld [vmem:[#allocation2 + $0xc8] sm:$0xff] }
 0x19f   : > { %v609_v18 = vld [vmem:[#allocation2 + $0x58] sm:$0xff]  ;;  %640 = vst [vmem:[%s1342_s27 + $0x80] sm:$0xff] %v608_v17  ;;  %v612_v21 = vld [vmem:[#allocation2 + $0xe0] sm:$0xff]  ;;  %642 = vst [vmem:[%s1342_s27 + $0x90] sm:$0xff] %v610_v19 }
 0x1a0   : > { %641 = vst [vmem:[%s1342_s27 + $0x88] sm:$0xff] %v609_v18  ;;  %643 = vst [vmem:[%s1342_s27 + $0x98] sm:$0xff] %v611_v20  ;;  %v613_v22 = vld [vmem:[#allocation2 + $0x90] sm:$0xff]  ;;  %v615_v24 = vld [vmem:[#allocation2 + $0xc0] sm:$0xff] }
 0x1a1   : > { %644 = vst [vmem:[%s1342_s27 + $0xa0] sm:$0xff] %v612_v21  ;;  %v614_v23 = vld [vmem:[#allocation2 + $0x70] sm:$0xff]  ;;  %645 = vst [vmem:[%s1342_s27 + $0xa8] sm:$0xff] %v613_v22  ;;  %v616_v25 = vld [vmem:[#allocation2 + $0xa8] sm:$0xff] }
 0x1a2   : > { %646 = vst [vmem:[%s1342_s27 + $0xb0] sm:$0xff] %v614_v23  ;;  %647 = vst [vmem:[%s1342_s27 + $0xb8] sm:$0xff] %v615_v24  ;;  %v617_v26 = vld [vmem:[#allocation2 + $0xd0] sm:$0xff]  ;;  %v619_v28 = vld [vmem:[#allocation2 + $0x28] sm:$0xff] }
 0x1a3   : > { %v618_v27 = vld [vmem:[#allocation2 + $0x10] sm:$0xff]  ;;  %648 = vst [vmem:[%s1342_s27 + $0xc0] sm:$0xff] %v616_v25  ;;  %649 = vst [vmem:[%s1342_s27 + $0xc8] sm:$0xff] %v617_v26  ;;  %v620_v29 = vld [vmem:[#allocation2 + $0xa0] sm:$0xff] }
 0x1a4   : > { %650 = vst [vmem:[%s1342_s27 + $0xd0] sm:$0xff] %v618_v27  ;;  %v621_v30 = vld [vmem:[#allocation2 + $0xf8] sm:$0xff]  ;;  %651 = vst [vmem:[%s1342_s27 + $0xd8] sm:$0xff] %v619_v28  ;;  %v622_v31 = vld [vmem:[#allocation2 + $0x20] sm:$0xff] }
 0x1a5   : > { %652 = vst [vmem:[%s1342_s27 + $0xe0] sm:$0xff] %v620_v29  ;;  %653 = vst [vmem:[%s1342_s27 + $0xe8] sm:$0xff] %v621_v30  ;;  %v623_v32 = vld [vmem:[#allocation2 + $0x98] sm:$0xff] }
 0x1a6   : > { %654 = vst [vmem:[%s1342_s27 + $0xf0] sm:$0xff] %v622_v31  ;;  %655 = vst [vmem:[%s1342_s27 + $0xf8] sm:$0xff] %v623_v32 }
 0x1a7 PF: > { %s788_s22 = sshll.u32 %s1141_s15, 1  ;;  %s795_s24 = sshll.u32 %s1145_s16, 9 }
 0x1a8   : > { %s673_s8 = sshll.u32 %s1342_s27, 4  ;;  %s670_s6 = sadd.s32 %s795_s24, %s788_s22  ;;  %s1414_s8 = int_to_ptr.vmem [resolvable:$true] %s673_s8 }
 0x1a9   : > { %s790_s20 = sshll.u32 %s670_s6, 7  ;;  %s1423_s7 = scalar_lea.sflag [#allocation5], %s189_s9 }
 0x1aa   : > { %s1419_s1 = scalar_lea.hbm %s1485_s2, %s790_s20  ;;  %s1033_s26 = scalar_lea.vmem %s1414_s8, 4096 }
 0x1ab   : > { %p1034_p0 = scmp.ne.s32.totalorder %s1414_s8, %s1033_s26  ;;  %p1510_p13 = scmp.ne.s32.totalorder %s1499_s25, 0 }
 0x1ac   : > { %s1164_s15 = smov [#allocation8]  }
 0x1ad   : > { %p1035_p5 = pnand %p1034_p0, %p1510_p13  ;;  %s1037_s16 = sshll.u32 %s1164_s15, 4  ;;  %s1038_s16 = int_to_ptr.vmem [resolvable:$false] %s1037_s16 }
 0x1ae   : > { %s1039_s21 = scalar_lea.vmem %s1038_s16, 8192  ;;  %p1040_p8 = scmp.lt.s32.totalorder %s1414_s8, %s1038_s16 }
 0x1af   : > { %p1036_p6 = pneg %p1035_p5  ;;  %p1041_p7 = scmp.lt.s32.totalorder %s1039_s21, %s1033_s26 }
 0x1b1   : > { %p1042_p9 = por %p1041_p7, %p1040_p8 }
 0x1b3   : > { %p1043_p10 = pnand %p1042_p9, %p1036_p6 }
 0x1b5   : > { %1046 = shalt.err (!%p1043_p10)
}
 0x1b6   : > { %s1047_s28 = scalar_lea.hbm %s1419_s1, 4096  ;;  %s1051_s5 = scalar_lea.hbm %s1485_s2, 131072 }
 0x1b7   : > { %p1048_p12 = scmp.ne.s32.totalorder %s1419_s1, %s1047_s28  ;;  %p1052_p11 = scmp.lt.s32.totalorder %s1419_s1, %s1485_s2 }
 0x1b8   : > { %p1053_p1 = scmp.lt.s32.totalorder %s1051_s5, %s1047_s28 }
 0x1b9   : > { %p1049_p2 = pnand %p1048_p12, %p1510_p13 }
 0x1ba   : > { %p1054_p3 = por %p1053_p1, %p1052_p11 }
 0x1bb   : > { %p1050_p4 = pneg %p1049_p2 }
 0x1bd   : > { %p1055_p0 = pnand %p1054_p3, %p1050_p4 }
 0x1bf   : > { %1058 = shalt.err (!%p1055_p0)
}
 0x1c0   : > { %s1165_s27 = smov 256   ;;  %s1166_s22 = smov 4096  }
 0x1c1   : > { %s1167_s24 = smov 16  }
 0x1c2   : > { %866 = dma.vmem_to_hbm [thread:$0]  (%p1510_p13), %s1414_s8, 4096, %s1419_s1, %s1423_s7, %s1165_s27, %s1166_s22, %s1167_s24  }
 0x1c3 PF: > { %s1511_s6 = sld [smem:[#allocation12_spill]]  ;;  %p883_p5 = scmp.ge.s32.totalorder %s1157_s19, 2 }
 0x1c4   : > { %s1512_s20 = sld [smem:[#allocation14_spill]] }
 0x1c9   : > { %s688_s12 = sand.u32 1, %s1511_s6  }
 0x1ca   : > { %p1513_p6 = scmp.ne.s32.totalorder %s1512_s20, 0  ;;  %s689_s23 = scalar_lea.sflag [#allocation5], %s688_s12 }
 0x1cc   : > { %p877_p8 = pnand %p883_p5, %p1513_p6 }
 0x1ce   : > { %p878_p7 = pneg %p877_p8 }
 0x1d0   : > { %1112 = dma.done.wait (%p878_p7), %s689_s23, 4096  }
 0x1d1   : > { %1114 = vsyncadd (%p878_p7), %s689_s23, 4294963200  ;;  %s19_s19 = sadd.s32 1, %s1157_s19   ;;  %s1514_s15 = sld [smem:[#allocation13_spill]] }
 0x1d2   : > { %p16_p9 = scmp.ge.s32.totalorder %s19_s19, 34   ;;  %s1515_s17 = sld [smem:[#allocation15_spill]] }
 0x1d3   : > { %s1516_s25 = sld [smem:[#allocation16_spill]]  ;;  %s1517_s9 = smov %s1121_s10 }
 0x1d4   : > { %s1518_s10 = smov %s1125_s11  ;;  %s1519_s11 = smov %s1306_s4 }
 0x1d5   : > { %s1520_s12 = smov %s1133_s13  ;;  %s1521_s13 = smov %s1137_s14 }
 0x1d6   : > { %s1522_s14 = smov %s1301_s3  ;;  %s1523_s16 = smov %s1153_s18 }
 0x1d7   :  { %18 = sbr.rel (!%p16_p9) target bundleno = 12 (0xc), region = 89 }
 0x1d9   : > { %s1524_s18 = smov %s1516_s25 }
 0x1dc   :  { %694 = vsyncpa [#allocation4], 1 }
 0x1dd   :  { %696 = vsyncpa [#allocation4 + $0x1], 1 }
 0x1de   :  { %697 = vsyncpa [#allocation7], 1 }
 0x1df   :  { %698 = vsyncpa [#allocation5], 1 }
 0x1e0   :  { %700 = vsyncpa [#allocation5 + $0x1], 1 }

</bundles_post_ra>
